<compile_context>
chip_gen: v5e
topology: v5e:2x2
jax: 0.10.0
libtpu: 0.0.40
codegen_flags: <defaults>
</compile_context>

<pallas_src>
import jax
import jax.numpy as jnp
from jax import lax
from jax.experimental import pallas as pl
from jax.experimental.pallas import tpu as pltpu


def logistic_regression_kernel(x_ref, w_ref, b_ref, o_ref):
    # x_ref: (tile_b, H) VMEM, native input dtype (f32 or bf16)
    # w_ref: (1, H)     VMEM, same dtype as x (resident across batch tiles)
    # b_ref: (1, 1)     SMEM f32
    # o_ref: (1, tile_b) VMEM f32 (lane-dense row)
    z = lax.dot_general(
        w_ref[...], x_ref[...],
        dimension_numbers=(((1,), (1,)), ((), ())),   # contract over H on the MXU
        preferred_element_type=jnp.float32,
    )                                                 # -> (1, tile_b)
    o_ref[...] = jax.nn.sigmoid(z + b_ref[0, 0])


def _tensorcores_per_chip():
    """Best-effort detection of multi-TensorCore chips (v7x has 2 TCs/chip)."""
    try:
        kind = jax.devices()[0].device_kind.lower()
    except Exception:
        return 1
    if any(tag in kind for tag in ("v7", "7x", "tpu7")):
        return 2
    return 1


def _vmem_budgets():
    """(scoped vmem limit, per-input-buffer budget) sized per generation."""
    cap = None
    try:
        info = pltpu.get_tpu_info()
        cap = getattr(info, "vmem_capacity_bytes", None)
    except Exception:
        cap = None
    if not cap:
        cap = 64 * 1024 * 1024          # conservative: v7x per-TC physical VMEM
    limit = min((int(cap) * 3) // 4, 96 * 1024 * 1024)   # v5e/v6e -> 96 MiB, v7x -> 48 MiB
    limit = max(limit, 32 * 1024 * 1024)
    per_buffer = min(16 * 1024 * 1024, limit // 4)        # 2x double-buffered x tiles fit easily
    return limit, per_buffer


def logistic_regression_forward(inputs, w, b, *, tile_b=None):
    """inputs: (B, H), w: (H,), b: (1,) -> (B,) f32 logits (sigmoid activations)."""
    B, H = inputs.shape
    compute_dtype = inputs.dtype
    w2d = w.astype(compute_dtype).reshape(1, H)
    b2d = b.astype(jnp.float32).reshape(1, 1)

    # Pad H up to a full lane width once in HBM (zeros don't change the dot).
    H_pad = max(H, 128)
    if H_pad != H:
        inputs = jnp.pad(inputs, ((0, 0), (0, H_pad - H)))
        w2d = jnp.pad(w2d, ((0, 0), (0, H_pad - H)))

    vmem_limit, per_buffer_budget = _vmem_budgets()

    # Largest lane-multiple batch tile fitting the per-buffer budget (x is the
    # only large VMEM consumer now: no in-kernel f32 upcast / product temporaries).
    if tile_b is None:
        bytes_per_row = H_pad * jnp.dtype(inputs.dtype).itemsize
        tile_b = per_buffer_budget // max(bytes_per_row, 1)
    tile_b = max(128, (int(tile_b) // 128) * 128)      # multiple of 128 (output lane axis)
    b_pad128 = ((B + 127) // 128) * 128
    tile_b = min(tile_b, b_pad128)                     # don't exceed (padded) batch

    grid_b = pl.cdiv(B, tile_b)
    B_pad = grid_b * tile_b
    if B_pad != B:
        inputs = jnp.pad(inputs, ((0, B_pad - B), (0, 0)))

    # Only CORE_PARALLEL actually splits the grid across v7x's two TensorCores.
    if grid_b >= 2 and _tensorcores_per_chip() >= 2:
        semantics = (pltpu.CORE_PARALLEL,)
    else:
        semantics = ("parallel",)

    out = pl.pallas_call(
        logistic_regression_kernel,
        out_shape=jax.ShapeDtypeStruct((1, B_pad), jnp.float32),
        grid=(grid_b,),
        in_specs=[
            pl.BlockSpec((tile_b, H_pad), lambda i: (i, 0)),   # streamed x tiles
            pl.BlockSpec((1, H_pad), lambda i: (0, 0)),        # resident weights
            pl.BlockSpec(memory_space=pltpu.SMEM),             # scalar bias
        ],
        out_specs=pl.BlockSpec((1, tile_b), lambda i: (0, i)), # lane-dense output row
        compiler_params=pltpu.CompilerParams(
            dimension_semantics=semantics,
            vmem_limit_bytes=int(vmem_limit),
        ),
    )(inputs, w2d, b2d)
    return out[0, :B]


if __name__ == "__main__":
    key = jax.random.PRNGKey(0)
    k_x, k_w, k_b, k_x2 = jax.random.split(key, 4)

    batch, hidden = 8, 32
    # Deterministic parameter init mirroring torch.rand (uniform [0, 1))
    w = jax.random.uniform(k_w, (hidden,), dtype=jnp.float32)
    b = jax.random.uniform(k_b, (1,), dtype=jnp.float32)
    x = jax.random.normal(k_x, (batch, hidden), dtype=jnp.float32)

    logits = logistic_regression_forward(x, w, b)
    jax.block_until_ready(logits)
    ref = jax.nn.sigmoid(x @ w + b[0])
    assert logits.shape == (batch,)
    assert jnp.allclose(logits, ref, atol=1e-6, rtol=1e-6), (logits, ref)

    # Ragged batch (exercises the batch-padding path).
    x2 = jax.random.normal(k_x2, (13, hidden), dtype=jnp.float32)
    logits2 = logistic_regression_forward(x2, w, b)
    jax.block_until_ready(logits2)
    ref2 = jax.nn.sigmoid(x2 @ w + b[0])
    assert logits2.shape == (13,)
    assert jnp.allclose(logits2, ref2, atol=1e-6, rtol=1e-6), (logits2, ref2)

    # bf16 streaming path (halves HBM bytes; MXU takes bf16 natively, f32 accumulate).
    x_bf16 = x.astype(jnp.bfloat16)
    logits3 = logistic_regression_forward(x_bf16, w, b)
    jax.block_until_ready(logits3)
    ref3 = jax.nn.sigmoid(x_bf16.astype(jnp.float32) @ w + b[0])
    assert logits3.shape == (batch,)
    assert jnp.allclose(logits3, ref3, atol=3e-2, rtol=3e-2), (logits3, ref3)

    print("KERNEL_OK")
</pallas_src>

<mosaic_0001>
module attributes {stable_mosaic.version = 11 : i64} {
  func.func @logistic_regression_kernel(%arg0: i32, %arg1: memref<128x128xf32, #tpu.memory_space<vmem>>, %arg2: memref<1x128xf32, #tpu.memory_space<vmem>>, %arg3: memref<1x1xf32, #tpu.memory_space<smem>>, %arg4: memref<1x128xf32, #tpu.memory_space<vmem>>) attributes {dimension_semantics = [#tpu.dimension_semantics<parallel>], iteration_bounds = array<i64: 1>, scalar_prefetch = 0 : i64, scratch_operands = 0 : i64, tpu.core_type = #tpu.core_type<tc>, window_params = [{transform_indices = @transform_0, window_bounds = array<i64: 128, 128>}, {pipeline_mode = #tpu.pipeline_mode<synchronous>, transform_indices = @transform_1, window_bounds = array<i64: 1, 128>}, {transform_indices = @transform_2, window_bounds = array<i64: 1, 1>}, {transform_indices = @transform_3, window_bounds = array<i64: 1, 128>}]} {
    %c0 = arith.constant 0 : index
    %c0_0 = arith.constant 0 : index
    %0 = vector.load %arg2[%c0, %c0_0] : memref<1x128xf32, #tpu.memory_space<vmem>>, vector<1x128xf32>
    %c0_1 = arith.constant 0 : index
    %c0_2 = arith.constant 0 : index
    %1 = vector.load %arg1[%c0_1, %c0_2] : memref<128x128xf32, #tpu.memory_space<vmem>>, vector<128x128xf32>
    %cst = arith.constant dense<0.000000e+00> : vector<1x128xf32>
    %2 = tpu.matmul %0, %1, %cst {dimension_numbers = #tpu.dot_dimension_numbers<[1], [1], [0], [0], [0, 0, 1, 0], [], []>} : vector<1x128xf32>, vector<128x128xf32>, vector<1x128xf32> -> vector<1x128xf32>
    %c0_3 = arith.constant 0 : index
    %c0_4 = arith.constant 0 : index
    %3 = memref.load %arg3[%c0_3, %c0_4] : memref<1x1xf32, #tpu.memory_space<smem>>
    %4 = vector.broadcast %3 : f32 to vector<1x128xf32>
    %5 = arith.addf %2, %4 : vector<1x128xf32>
    %6 = arith.negf %5 : vector<1x128xf32>
    %7 = math.exp %6 : vector<1x128xf32>
    %cst_5 = arith.constant 1.000000e+00 : f32
    %8 = vector.broadcast %cst_5 : f32 to vector<1x128xf32>
    %9 = arith.addf %8, %7 : vector<1x128xf32>
    %10 = arith.divf %8, %9 : vector<1x128xf32>
    %c0_6 = arith.constant 0 : index
    %c0_7 = arith.constant 0 : index
    %11 = vector.load %arg4[%c0_6, %c0_7] : memref<1x128xf32, #tpu.memory_space<vmem>>, vector<1x128xf32>
    tpu.vector_store %arg4[%c0_6, %c0_7], %10 {strides = array<i32>} : memref<1x128xf32, #tpu.memory_space<vmem>>, vector<1x128xf32>,
    return
  }
  func.func @transform_0(%arg0: i32) -> (i32, i32) {
    %c0_i32 = arith.constant 0 : i32
    %c0_i32_0 = arith.constant 0 : i32
    return %arg0, %c0_i32 : i32, i32
  }
  func.func @transform_1(%arg0: i32) -> (i32, i32) {
    %c0_i32 = arith.constant 0 : i32
    %c0_i32_0 = arith.constant 0 : i32
    %c0_i32_1 = arith.constant 0 : i32
    return %c0_i32, %c0_i32_0 : i32, i32
  }
  func.func @transform_2(%arg0: i32) -> (i32, i32) {
    %c0_i32 = arith.constant 0 : i32
    %c0_i32_0 = arith.constant 0 : i32
    %c0_i32_1 = arith.constant 0 : i32
    return %c0_i32, %c0_i32_0 : i32, i32
  }
  func.func @transform_3(%arg0: i32) -> (i32, i32) {
    %c0_i32 = arith.constant 0 : i32
    %c0_i32_0 = arith.constant 0 : i32
    return %c0_i32, %arg0 : i32, i32
  }
}

</mosaic_0001>

<bundles_post_ra>
// kernel: tpu_custom_call.1
= control target key start
LH: loop header
LB: loop body
LE: loop exit
PB: predicated region body
PF: predicated region fallthrough
CT: control target
= control target key end

     0   :  { %9 = vsyncpa [#allocation4], 0  ;;  %s205_s0 = inlined_call_operand.hbm [shape: f32[128,128], index: 0, kind: input, shape index: {}]   ;;  %s206_s1 = inlined_call_operand.vmem [shape: f32[1,128], index: 1, kind: input, shape index: {}]   ;;  %s207_s2 = inlined_call_operand.<no memory space> [shape: f32[1,1], index: 2, kind: input, shape index: {}]   ;;  %s208_s3 = inlined_call_operand.hbm [shape: f32[1,128], index: 3, kind: output, shape index: {}]  }
   0x1   :  { %10 = vsyncpa [#allocation5], 0  ;;  %s15_s14 = sshll.u32 %s205_s0, 4  ;;  %s169_s15 = smov [#allocation3]   ;;  %s16_s14 = int_to_ptr.hbm [resolvable:$true] %s15_s14 }
   0x2   :  { %s17_s16 = sshll.u32 %s169_s15, 4  ;;  %s170_s17 = smov 128   ;;  %s18_s16 = int_to_ptr.vmem [resolvable:$true] %s17_s16 }
   0x3   :  { %s171_s18 = smov 8  }
   0x4   :  { %23 = dma.hbm_to_vmem [thread:$0]  %s16_s14, 2048, %s18_s16, [#allocation4], %s170_s17, %s170_s17, %s171_s18  }
   0x5   :  { %165 = dma.done.wait [#allocation4], 2048  }
   0x6   :  { %166 = vsyncadd [#allocation4], 4294965248  ;;  %v48_v0 = vld [vmem:[#allocation3 + $0x78] sm:$0xff]  ;;  %v47_v1 = vld [vmem:[#allocation3 + $0x70] sm:$0xff]  ;;  %v50_v17 = vstv %s207_s2  ;;  %s98_s2 = sshll.u32 %s208_s3, 4  ;;  %s99_s2 = int_to_ptr.hbm [resolvable:$true] %s98_s2 }
   0x7   :  { %51 = vmatpush.xpose.msra.mxu0 %v48_v0  ;;  %v46_v2 = vld [vmem:[#allocation3 + $0x68] sm:$0xff]  ;;  %v45_v3 = vld [vmem:[#allocation3 + $0x60] sm:$0xff]  ;;  %v44_v4 = vld [vmem:[#allocation3 + $0x58] sm:$0xff] }
   0x8   :  { %v43_v5 = vld [vmem:[#allocation3 + $0x50] sm:$0xff]  ;;  %v42_v6 = vld [vmem:[#allocation3 + $0x48] sm:$0xff]  ;;  %v41_v7 = vld [vmem:[#allocation3 + $0x40] sm:$0xff] }
   0x9   :  { %v40_v8 = vld [vmem:[#allocation3 + $0x38] sm:$0xff]  ;;  %v39_v9 = vld [vmem:[#allocation3 + $0x30] sm:$0xff]  ;;  %v38_v10 = vld [vmem:[#allocation3 + $0x28] sm:$0xff] }
   0xa   :  { %v37_v11 = vld [vmem:[#allocation3 + $0x20] sm:$0xff]  ;;  %v36_v12 = vld [vmem:[#allocation3 + $0x18] sm:$0xff]  ;;  %v35_v13 = vld [vmem:[#allocation3 + $0x10] sm:$0xff] }
   0xb   :  { %52 = vmatpush.xpose.msra.mxu0 %v47_v1  ;;  %v34_v14 = vld [vmem:[#allocation3 + $0x8] sm:$0xff]  ;;  %v33_v15 = vld [vmem:[#allocation3] sm:$0xff] }
   0xc   :  { %v32_v16 = vld [vmem:[%s206_s1] sm:$0x1]  ;;  %s172_s1 = smov [#allocation6]  }
   0xd   :  { %s96_s22 = sshll.u32 %s172_s1, 4  ;;  %s97_s22 = int_to_ptr.vmem [resolvable:$true] %s96_s22 }
   0xf   :  { %53 = vmatpush.xpose.msra.mxu0 %v46_v2 }
  0x13   :  { %54 = vmatpush.xpose.msra.mxu0 %v45_v3 }
  0x17   :  { %55 = vmatpush.xpose.msra.mxu0 %v44_v4 }
  0x1b   :  { %56 = vmatpush.xpose.msra.mxu0 %v43_v5 }
  0x1f   :  { %57 = vmatpush.xpose.msra.mxu0 %v42_v6 }
  0x23   :  { %58 = vmatpush.xpose.msra.mxu0 %v41_v7 }
  0x27   :  { %59 = vmatpush.xpose.msra.mxu0 %v40_v8 }
  0x2b   :  { %60 = vmatpush.xpose.msra.mxu0 %v39_v9 }
  0x2f   :  { %61 = vmatpush.xpose.msra.mxu0 %v38_v10 }
  0x33   :  { %62 = vmatpush.xpose.msra.mxu0 %v37_v11 }
  0x37   :  { %63 = vmatpush.xpose.msra.mxu0 %v36_v12 }
  0x3b   :  { %64 = vmatpush.xpose.msra.mxu0 %v35_v13 }
  0x3f   :  { %65 = vmatpush.xpose.msra.mxu0 %v34_v14 }
  0x43   :  { %66 = vmatpush.xpose.msra.mxu0 %v33_v15 }
  0x46   :  { %67 = vmatmul.f32.vlgmr.msra.gmra.mxu0 %v32_v16 }
  0xc3   :  { %v68_v18 = vpop.f32.mrf.mxu0 }
  0xc4   :  { %v69_v19 = vadd.f32 %v68_v18, %v50_v17 }
  0xc6   :  { %v108_v20 = vmul.f32 -1.442695, %v69_v19 }
  0xc8   :  { %113 = vpow2.f32 %v108_v20 }
  0xce   :  { %v114_v21 = vpop.eup %113 }
  0xcf   :  { %v74_v22 = vadd.f32 1.0, %v114_v21 }
  0xd1   :  { %115 = vrcp.f32 %v74_v22  ;;  %v86_v26 = vand.u32 2147483648, %v74_v22  ;;  %v84_v28 = vand.u32 2147483647, %v74_v22  ;;  %vm80_vm1 = vweird.f32 %v74_v22 }
  0xd3   :  { %v87_v30 = vor.u32 1.1754944e-38, %v86_v26  ;;  %vm85_vm3 = vcmp.eq.f32.partialorder %v84_v28, 8.507059e+37 }
  0xd7   :  { %v116_v23 = vpop.eup %115 }
  0xd8   :  { %v76_v24 = vmul.f32 %v116_v23, %v74_v22  ;;  %vm81_vm0 = vweird.f32 %v116_v23 }
  0xd9   :  { %vm82_vm2 = vmor %vm80_vm1, %vm81_vm0 }
  0xda   :  { %v77_v25 = vsub.f32 1.0, %v76_v24 }
  0xdc   :  { %v78_v27 = vmul.f32 %v116_v23, %v77_v25 }
  0xde   :  { %v79_v29 = vadd.f32 %v116_v23, %v78_v27 }
  0xe0   :  { %v83_v31 = vsel %vm82_vm2, %v116_v23, %v79_v29 }
  0xe1   :  { %v88_v32 = vsel %vm85_vm3, %v87_v30, %v83_v31 }
  0xe2   :  { %90 = vst [vmem:[#allocation6] sm:$0x1] %v88_v32 }
  0xe3   :  { %101 = dma.vmem_to_hbm [thread:$0]  %s97_s22, 16, %s99_s2, [#allocation5]  }
  0xe4   :  { %167 = dma.done.wait [#allocation5], 16  }
  0xe5   :  { %168 = vsyncadd [#allocation5], 4294967280 }
  0xe6   :  { %106 = vsyncpa [#allocation4], 1 }
  0xe7   :  { %107 = vsyncpa [#allocation5], 1 }

</bundles_post_ra>
